<compile_context>
chip_gen: v7x
topology: tpu7x:2x2x1
jax: 0.10.0
libtpu: 0.0.40
codegen_flags: <defaults>
</compile_context>

<pallas_src>
import jax
import jax.numpy as jnp
from jax.experimental import pallas as pl
from jax.experimental.pallas import tpu as pltpu


def _round_up(x, m):
    return (x + m - 1) // m * m


# ----------------------------------------------------------------------------
# Kernel
# ----------------------------------------------------------------------------
def _mlp_kernel(x_ref, w1_ref, b1_ref, w2_ref, b2_ref, w3_ref, b3_ref,
                logits_ref, probs_ref):
    # Cast streamed f32 activations to the bf16 compute dtype *inside* the
    # kernel (avoids a wrapper-side casted copy of x in HBM).
    x = x_ref[...].astype(w1_ref.dtype)

    # fc1 + ReLU.  K = input_size, unpadded (MXU handles short K; no HBM pad).
    h1 = jnp.dot(x, w1_ref[...], preferred_element_type=jnp.float32)
    h1 = jnp.maximum(h1 + b1_ref[...], 0.0)

    # fc2 + ReLU (hidden width 64, unpadded).
    h2 = jnp.dot(h1.astype(w2_ref.dtype), w2_ref[...],
                 preferred_element_type=jnp.float32)
    h2 = jnp.maximum(h2 + b2_ref[...], 0.0)

    # fc3 -> logits.  Classes unpadded: stores are masked vst but HBM write
    # bytes drop 16x vs. a 128-lane-padded class dim.
    logits = jnp.dot(h2.astype(w3_ref.dtype), w3_ref[...],
                     preferred_element_type=jnp.float32) + b3_ref[...]
    logits_ref[...] = logits.astype(logits_ref.dtype)

    # Fused softmax epilogue (predict_proba).  exp -> EUP, row reduce -> XLU;
    # both units are otherwise idle, so this is effectively free and saves a
    # second kernel / HBM round trip over the logits.
    m = jnp.max(logits, axis=-1, keepdims=True)
    p = jnp.exp(logits - m)
    s = jnp.sum(p, axis=-1, keepdims=True)
    probs_ref[...] = (p / s).astype(probs_ref.dtype)


# ----------------------------------------------------------------------------
# Parameter prep: weights stored [in_features, out_features] (PyTorch's
# transpose folded in), cast to bf16 for the MXU; biases stay f32.
# ----------------------------------------------------------------------------
def prepare_params(params, compute_dtype=jnp.bfloat16):
    return {
        "w1": params["w1"].astype(compute_dtype),
        "b1": params["b1"].astype(jnp.float32),
        "w2": params["w2"].astype(compute_dtype),
        "b2": params["b2"].astype(jnp.float32),
        "w3": params["w3"].astype(compute_dtype),
        "b3": params["b3"].astype(jnp.float32),
    }


def _choose_batch_tile(b_pad, max_tile_b):
    """Largest multiple-of-8 divisor of b_pad <= max_tile_b, preferring >= 2
    grid steps so v7x can shard the parallel batch axis across both TCs."""
    divisors = [t for t in range(8, b_pad + 1, 8) if b_pad % t == 0]
    multi = [t for t in divisors if t <= max_tile_b and b_pad // t >= 2]
    if multi:
        return max(multi)
    capped = [t for t in divisors if t <= max_tile_b]
    return max(capped) if capped else min(divisors)


# ----------------------------------------------------------------------------
# Forward pass wrapper
# ----------------------------------------------------------------------------
def net_forward(x, prepared, *, max_tile_b=1024):
    """Fused MLP forward.  Returns (logits [B, C], probs [B, C])."""
    B, K = x.shape
    C = prepared["w3"].shape[1]

    b_pad = _round_up(B, 8)
    tb = _choose_batch_tile(b_pad, max_tile_b)
    n_b = b_pad // tb

    # Row-only padding, and only when strictly needed (no column pad, no cast).
    x_in = x if b_pad == B else jnp.pad(x, ((0, b_pad - B), (0, 0)))

    # Accurate cost hint for XLA's scheduler (this kernel is tiny & mem-bound).
    flops = 2 * b_pad * (K * 128 + 128 * 64 + 64 * C)
    bytes_accessed = (
        x_in.size * x_in.dtype.itemsize
        + sum(prepared[k].size * prepared[k].dtype.itemsize
              for k in ("w1", "b1", "w2", "b2", "w3", "b3"))
        + 2 * b_pad * C * 4)  # logits + probs writes (f32)

    resident = lambda a: pl.BlockSpec(a.shape, lambda i: (0, 0))

    logits, probs = pl.pallas_call(
        _mlp_kernel,
        out_shape=(
            jax.ShapeDtypeStruct((b_pad, C), jnp.float32),
            jax.ShapeDtypeStruct((b_pad, C), jnp.float32),
        ),
        grid_spec=pltpu.PrefetchScalarGridSpec(
            num_scalar_prefetch=0,
            grid=(n_b,),
            in_specs=[
                pl.BlockSpec((tb, K), lambda i: (i, 0)),   # streamed x tiles
                resident(prepared["w1"]),                   # VMEM-resident
                resident(prepared["b1"]),
                resident(prepared["w2"]),
                resident(prepared["b2"]),
                resident(prepared["w3"]),
                resident(prepared["b3"]),
            ],
            out_specs=(
                pl.BlockSpec((tb, C), lambda i: (i, 0)),   # logits
                pl.BlockSpec((tb, C), lambda i: (i, 0)),   # probs
            ),
        ),
        compiler_params=pltpu.CompilerParams(
            dimension_semantics=("parallel",),   # shard batch across TCs (v7x)
        ),
        cost_estimate=pl.CostEstimate(
            flops=flops,
            transcendentals=b_pad * C,
            bytes_accessed=bytes_accessed,
        ),
    )(x_in, prepared["w1"], prepared["b1"], prepared["w2"], prepared["b2"],
      prepared["w3"], prepared["b3"])

    if b_pad != B:
        return logits[:B], probs[:B]
    return logits, probs


# ----------------------------------------------------------------------------
# Reference & synthetic parameters
# ----------------------------------------------------------------------------
def init_params(key, input_size, num_classes):
    """Deterministic synthetic parameters (same shapes as the PyTorch module)."""
    ks = jax.random.split(key, 6)

    def uniform_fanin(k, shape, fan_in):
        bound = 1.0 / jnp.sqrt(fan_in)
        return jax.random.uniform(k, shape, jnp.float32, -bound, bound)

    # Stored as [in, out] (transposed vs. PyTorch's [out, in]).
    w1 = uniform_fanin(ks[0], (input_size, 128), input_size)
    b1 = uniform_fanin(ks[1], (1, 128), input_size)
    w2 = uniform_fanin(ks[2], (128, 64), 128)
    b2 = uniform_fanin(ks[3], (1, 64), 128)
    w3 = uniform_fanin(ks[4], (64, num_classes), 64)
    b3 = uniform_fanin(ks[5], (1, num_classes), 64)
    return {"w1": w1, "b1": b1, "w2": w2, "b2": b2, "w3": w3, "b3": b3}


def net_forward_ref(x, p, compute_dtype=jnp.bfloat16):
    """Pure-JAX reference mirroring the kernel's dtype handling.
    (bf16 matmul operands + f32 accumulation; matches the kernel, not a
    bit-exact f32 PyTorch forward -- acceptable at these widths.)"""
    dt = compute_dtype
    h1 = jnp.dot(x.astype(dt), p["w1"].astype(dt),
                 preferred_element_type=jnp.float32) + p["b1"]
    h1 = jnp.maximum(h1, 0.0)
    h2 = jnp.dot(h1.astype(dt), p["w2"].astype(dt),
                 preferred_element_type=jnp.float32) + p["b2"]
    h2 = jnp.maximum(h2, 0.0)
    logits = jnp.dot(h2.astype(dt), p["w3"].astype(dt),
                     preferred_element_type=jnp.float32) + p["b3"]
    return logits


if __name__ == "__main__":
    key = jax.random.PRNGKey(0)
    k_param, k_x = jax.random.split(key)

    batch = 8
    input_size = 32   # stands in for X_train.shape[1]
    num_classes = 8   # stands in for len(label_encoder.classes_)

    params = init_params(k_param, input_size, num_classes)
    prepared = prepare_params(params)
    x = jax.random.normal(k_x, (batch, input_size), jnp.float32)

    logits, probs = net_forward(x, prepared)
    logits, probs = jax.block_until_ready((logits, probs))

    ref = net_forward_ref(x, params)
    assert logits.shape == (batch, num_classes)
    assert probs.shape == (batch, num_classes)
    assert jnp.allclose(logits, ref, atol=1e-3, rtol=1e-3), "logits mismatch"

    # predict_proba: fused softmax must match softmax of the kernel's logits.
    ref_probs = jax.nn.softmax(logits, axis=1)
    assert jnp.allclose(probs, ref_probs, atol=1e-4), "softmax mismatch"
    assert jnp.allclose(jnp.sum(probs, axis=1), 1.0, atol=1e-5)

    print("KERNEL_OK")
</pallas_src>

<mosaic_0001>
module attributes {stable_mosaic.version = 11 : i64} {
  func.func @_mlp_kernel(%arg0: i32, %arg1: memref<8x32xf32, #tpu.memory_space<vmem>>, %arg2: memref<32x128xbf16, #tpu.memory_space<vmem>>, %arg3: memref<1x128xf32, #tpu.memory_space<vmem>>, %arg4: memref<128x64xbf16, #tpu.memory_space<vmem>>, %arg5: memref<1x64xf32, #tpu.memory_space<vmem>>, %arg6: memref<64x8xbf16, #tpu.memory_space<vmem>>, %arg7: memref<1x8xf32, #tpu.memory_space<vmem>>, %arg8: memref<8x8xf32, #tpu.memory_space<vmem>>, %arg9: memref<8x8xf32, #tpu.memory_space<vmem>>) attributes {dimension_semantics = [#tpu.dimension_semantics<parallel>], iteration_bounds = array<i64: 1>, scalar_prefetch = 0 : i64, scratch_operands = 0 : i64, tpu.core_type = #tpu.core_type<tc>, window_params = [{transform_indices = @transform_0, window_bounds = array<i64: 8, 32>}, {pipeline_mode = #tpu.pipeline_mode<synchronous>, transform_indices = @transform_1, window_bounds = array<i64: 32, 128>}, {pipeline_mode = #tpu.pipeline_mode<synchronous>, transform_indices = @transform_2, window_bounds = array<i64: 1, 128>}, {pipeline_mode = #tpu.pipeline_mode<synchronous>, transform_indices = @transform_3, window_bounds = array<i64: 128, 64>}, {pipeline_mode = #tpu.pipeline_mode<synchronous>, transform_indices = @transform_4, window_bounds = array<i64: 1, 64>}, {pipeline_mode = #tpu.pipeline_mode<synchronous>, transform_indices = @transform_5, window_bounds = array<i64: 64, 8>}, {pipeline_mode = #tpu.pipeline_mode<synchronous>, transform_indices = @transform_6, window_bounds = array<i64: 1, 8>}, {transform_indices = @transform_7, window_bounds = array<i64: 8, 8>}, {transform_indices = @transform_8, window_bounds = array<i64: 8, 8>}]} {
    %c0 = arith.constant 0 : index
    %c0_0 = arith.constant 0 : index
    %0 = vector.load %arg1[%c0, %c0_0] : memref<8x32xf32, #tpu.memory_space<vmem>>, vector<8x32xf32>
    %1 = arith.truncf %0 : vector<8x32xf32> to vector<8x32xbf16>
    %c0_1 = arith.constant 0 : index
    %c0_2 = arith.constant 0 : index
    %2 = vector.load %arg2[%c0_1, %c0_2] : memref<32x128xbf16, #tpu.memory_space<vmem>>, vector<32x128xbf16>
    %cst = arith.constant dense<0.000000e+00> : vector<8x128xf32>
    %3 = tpu.matmul %1, %2, %cst {dimension_numbers = #tpu.dot_dimension_numbers<[1], [0], [0], [1], [0, 0, 1, 1], [], []>} : vector<8x32xbf16>, vector<32x128xbf16>, vector<8x128xf32> -> vector<8x128xf32>
    %c0_3 = arith.constant 0 : index
    %c0_4 = arith.constant 0 : index
    %4 = vector.load %arg3[%c0_3, %c0_4] : memref<1x128xf32, #tpu.memory_space<vmem>>, vector<1x128xf32>
    %5 = vector.broadcast %4 : vector<1x128xf32> to vector<8x128xf32>
    %6 = arith.addf %3, %5 : vector<8x128xf32>
    %cst_5 = arith.constant 0.000000e+00 : f32
    %7 = vector.broadcast %cst_5 : f32 to vector<8x128xf32>
    %8 = arith.maximumf %6, %7 : vector<8x128xf32>
    %9 = arith.truncf %8 : vector<8x128xf32> to vector<8x128xbf16>
    %c0_6 = arith.constant 0 : index
    %c0_7 = arith.constant 0 : index
    %10 = vector.load %arg4[%c0_6, %c0_7] : memref<128x64xbf16, #tpu.memory_space<vmem>>, vector<128x64xbf16>
    %cst_8 = arith.constant dense<0.000000e+00> : vector<8x64xf32>
    %11 = tpu.matmul %9, %10, %cst_8 {dimension_numbers = #tpu.dot_dimension_numbers<[1], [0], [0], [1], [0, 0, 1, 1], [], []>} : vector<8x128xbf16>, vector<128x64xbf16>, vector<8x64xf32> -> vector<8x64xf32>
    %c0_9 = arith.constant 0 : index
    %c0_10 = arith.constant 0 : index
    %12 = vector.load %arg5[%c0_9, %c0_10] : memref<1x64xf32, #tpu.memory_space<vmem>>, vector<1x64xf32>
    %13 = vector.broadcast %12 : vector<1x64xf32> to vector<8x64xf32>
    %14 = arith.addf %11, %13 : vector<8x64xf32>
    %cst_11 = arith.constant 0.000000e+00 : f32
    %15 = vector.broadcast %cst_11 : f32 to vector<8x64xf32>
    %16 = arith.maximumf %14, %15 : vector<8x64xf32>
    %17 = arith.truncf %16 : vector<8x64xf32> to vector<8x64xbf16>
    %c0_12 = arith.constant 0 : index
    %c0_13 = arith.constant 0 : index
    %18 = vector.load %arg6[%c0_12, %c0_13] : memref<64x8xbf16, #tpu.memory_space<vmem>>, vector<64x8xbf16>
    %cst_14 = arith.constant dense<0.000000e+00> : vector<8x8xf32>
    %19 = tpu.matmul %17, %18, %cst_14 {dimension_numbers = #tpu.dot_dimension_numbers<[1], [0], [0], [1], [0, 0, 1, 1], [], []>} : vector<8x64xbf16>, vector<64x8xbf16>, vector<8x8xf32> -> vector<8x8xf32>
    %c0_15 = arith.constant 0 : index
    %c0_16 = arith.constant 0 : index
    %20 = vector.load %arg7[%c0_15, %c0_16] : memref<1x8xf32, #tpu.memory_space<vmem>>, vector<1x8xf32>
    %21 = vector.broadcast %20 : vector<1x8xf32> to vector<8x8xf32>
    %22 = arith.addf %19, %21 : vector<8x8xf32>
    %c0_17 = arith.constant 0 : index
    %c0_18 = arith.constant 0 : index
    %23 = vector.load %arg8[%c0_17, %c0_18] : memref<8x8xf32, #tpu.memory_space<vmem>>, vector<8x8xf32>
    tpu.vector_store %arg8[%c0_17, %c0_18], %22 {strides = array<i32>} : memref<8x8xf32, #tpu.memory_space<vmem>>, vector<8x8xf32>,
    %cst_19 = arith.constant dense<0xFF800000> : vector<8xf32>
    %24 = vector.multi_reduction <maximumf>, %22, %cst_19 [1] : vector<8x8xf32> to vector<8xf32>
    %25 = vector.shape_cast %24 : vector<8xf32> to vector<8x1xf32>
    %26 = vector.broadcast %25 : vector<8x1xf32> to vector<8x8xf32>
    %27 = arith.subf %22, %26 : vector<8x8xf32>
    %28 = math.exp %27 : vector<8x8xf32>
    %cst_20 = arith.constant dense<0.000000e+00> : vector<8xf32>
    %29 = vector.multi_reduction <add>, %28, %cst_20 [1] : vector<8x8xf32> to vector<8xf32>
    %30 = vector.shape_cast %29 : vector<8xf32> to vector<8x1xf32>
    %31 = vector.broadcast %30 : vector<8x1xf32> to vector<8x8xf32>
    %32 = arith.divf %28, %31 : vector<8x8xf32>
    %c0_21 = arith.constant 0 : index
    %c0_22 = arith.constant 0 : index
    %33 = vector.load %arg9[%c0_21, %c0_22] : memref<8x8xf32, #tpu.memory_space<vmem>>, vector<8x8xf32>
    tpu.vector_store %arg9[%c0_21, %c0_22], %32 {strides = array<i32>} : memref<8x8xf32, #tpu.memory_space<vmem>>, vector<8x8xf32>,
    return
  }
  func.func @transform_0(%arg0: i32) -> (i32, i32) {
    %c0_i32 = arith.constant 0 : i32
    %c0_i32_0 = arith.constant 0 : i32
    return %arg0, %c0_i32 : i32, i32
  }
  func.func @transform_1(%arg0: i32) -> (i32, i32) {
    %c0_i32 = arith.constant 0 : i32
    %c0_i32_0 = arith.constant 0 : i32
    %c0_i32_1 = arith.constant 0 : i32
    return %c0_i32, %c0_i32_0 : i32, i32
  }
  func.func @transform_2(%arg0: i32) -> (i32, i32) {
    %c0_i32 = arith.constant 0 : i32
    %c0_i32_0 = arith.constant 0 : i32
    %c0_i32_1 = arith.constant 0 : i32
    return %c0_i32, %c0_i32_0 : i32, i32
  }
  func.func @transform_3(%arg0: i32) -> (i32, i32) {
    %c0_i32 = arith.constant 0 : i32
    %c0_i32_0 = arith.constant 0 : i32
    %c0_i32_1 = arith.constant 0 : i32
    return %c0_i32, %c0_i32_0 : i32, i32
  }
  func.func @transform_4(%arg0: i32) -> (i32, i32) {
    %c0_i32 = arith.constant 0 : i32
    %c0_i32_0 = arith.constant 0 : i32
    %c0_i32_1 = arith.constant 0 : i32
    return %c0_i32, %c0_i32_0 : i32, i32
  }
  func.func @transform_5(%arg0: i32) -> (i32, i32) {
    %c0_i32 = arith.constant 0 : i32
    %c0_i32_0 = arith.constant 0 : i32
    %c0_i32_1 = arith.constant 0 : i32
    return %c0_i32, %c0_i32_0 : i32, i32
  }
  func.func @transform_6(%arg0: i32) -> (i32, i32) {
    %c0_i32 = arith.constant 0 : i32
    %c0_i32_0 = arith.constant 0 : i32
    %c0_i32_1 = arith.constant 0 : i32
    return %c0_i32, %c0_i32_0 : i32, i32
  }
  func.func @transform_7(%arg0: i32) -> (i32, i32) {
    %c0_i32 = arith.constant 0 : i32
    %c0_i32_0 = arith.constant 0 : i32
    return %arg0, %c0_i32 : i32, i32
  }
  func.func @transform_8(%arg0: i32) -> (i32, i32) {
    %c0_i32 = arith.constant 0 : i32
    %c0_i32_0 = arith.constant 0 : i32
    return %arg0, %c0_i32 : i32, i32
  }
}

</mosaic_0001>

<bundles_post_ra>
// kernel: tpu_custom_call.1
= control target key start
LH: loop header
LB: loop body
LE: loop exit
PB: predicated region body
PF: predicated region fallthrough
CT: control target
= control target key end

     0   :  { %14 = vsyncpa [#allocation3], 0  ;;  %v486_v1 = vmov 0.0   ;;  %vm487_vm0 = vmmov 0   ;;  %vm56_vm1 = vcmask 261120   ;;  %s620_s0 = inlined_call_operand.vmem [shape: f32[8,32], index: 0, kind: input, shape index: {}]   ;;  %s621_s1 = inlined_call_operand.vmem [shape: bf16[32,128], index: 1, kind: input, shape index: {}]   ;;  %s622_s2 = inlined_call_operand.vmem [shape: f32[1,128], index: 2, kind: input, shape index: {}]   ;;  %s623_s3 = inlined_call_operand.vmem [shape: bf16[128,64], index: 3, kind: input, shape index: {}]   ;;  %s624_s4 = inlined_call_operand.vmem [shape: f32[1,64], index: 4, kind: input, shape index: {}]   ;;  %s625_s5 = inlined_call_operand.vmem [shape: bf16[64,8], index: 5, kind: input, shape index: {}]   ;;  %s626_s6 = inlined_call_operand.vmem [shape: f32[1,8], index: 6, kind: input, shape index: {}]   ;;  %s627_s7 = inlined_call_operand.hbm [shape: f32[8,8], index: 7, kind: output, shape index: {0}]   ;;  %s628_s8 = inlined_call_operand.hbm [shape: f32[8,8], index: 8, kind: output, shape index: {1}]  }
   0x1   :  { %v420_v0 = vld [vmem:[%s621_s1] sm:$0xff]   ;;  %376 = vmatprep.subr.bf16.mxu0 %v486_v1  ;;  %v421_v2 = vld [vmem:[%s621_s1 + $0x8] sm:$0xff]   ;;  %384 = vmatprep.subr.bf16.mxu1 %v486_v1  ;;  %v424_v7 = vld [vmem:[%s623_s3 + $0x10] sm:$0xff]  }
   0x2   :  { %377 = vmatpush3.bf16.msra.mxu0 %v420_v0  ;;  %380 = vmatprep.mubr.msk.bf16.mxu0 %vm487_vm0, %v486_v1  ;;  %v31_v3 = vld [vmem:[%s620_s0] sm:$0xff]  ;;  %v423_v6 = vld [vmem:[%s623_s3 + $0x8] sm:$0xff]  }
   0x3   :  { %378 = vmatprep.subr.bf16.mxu0 %v486_v1  ;;  %v422_v4 = vld [vmem:[%s623_s3] sm:$0xff]   ;;  %400 = vmatprep.mubr.msk.bf16.mxu1 %vm487_vm0, %v486_v1  ;;  %v32_v5 = vpack.c.bf16 %v31_v3, %v31_v3 }
   0x4   :  { %385 = vmatpush3.bf16.msra.mxu1 %v422_v4 }
   0x5   :  { %386 = vmatprep.subr.bf16.mxu1 %v486_v1 }
   0x6   :  { %379 = vmatpush3.bf16.msra.mxu0 %v421_v2 }
   0x7   :  { %404 = vmatprep.subr.bf16.mxu0 %v486_v1 }
   0x8   :  { %387 = vmatpush3.bf16.msra.mxu1 %v423_v6 }
   0x9   :  { %381 = vmatmul.mubr.msk.bf16.vlgmr.msra.gmra.mrb[0].mxu0 %vm56_vm1, %v32_v5  ;;  %388 = vmatprep.subr.bf16.mxu1 %v486_v1 }
   0xa   :  { %412 = vmatprep.mubr.msk.bf16.mxu0 %vm487_vm0, %v486_v1 }
   0xb   :  { %15 = vsyncpa [#allocation5], 0  ;;  %v425_v8 = vld [vmem:[%s623_s3 + $0x18] sm:$0xff]   ;;  %v426_v9 = vld [vmem:[%s623_s3 + $0x20] sm:$0xff]   ;;  %vm254_vm2 = vcmask 523264   ;;  %vm298_vm3 = vcmask 64512  }
   0xc   :  { %389 = vmatpush3.bf16.msra.mxu1 %v424_v7  ;;  %v427_v10 = vld [vmem:[%s623_s3 + $0x28] sm:$0xff]   ;;  %v428_v11 = vld [vmem:[%s623_s3 + $0x30] sm:$0xff]   ;;  %v429_v12 = vld [vmem:[%s623_s3 + $0x38] sm:$0xff]  }
   0xd   :  { %390 = vmatprep.subr.bf16.mxu1 %v486_v1  ;;  %v430_v13 = vld [vmem:[%s625_s5] sm:$0xff]   ;;  %v431_v14 = vld [vmem:[%s625_s5 + $0x8] sm:$0xff]   ;;  %v432_v23 = vld [vmem:[%s625_s5 + $0x10] sm:$0xff]  }
   0xe   :  { %405 = vmatpush3.bf16.msra.mxu0 %v430_v13  ;;  %v340_v15 = vld [vmem:[%s622_s2] ss:$0 sm:$0xff]  ;;  %v433_v24 = vld [vmem:[%s625_s5 + $0x18] sm:$0xff]  }
   0xf   :  { %406 = vmatprep.subr.bf16.mxu0 %v486_v1  ;;  %v344_v25 = vld [vmem:[%s624_s4] ss:$0 sm:$0xff]  ;;  %s488_s4 = smov [#allocation2]  }
  0x10   :  { %391 = vmatpush3.bf16.msra.mxu1 %v425_v8  ;;  %v353_v33 = vld [vmem:[%s626_s6] ss:$0 sm:$0xff]  ;;  %s318_s5 = sshll.u32 %s488_s4, 4  ;;  %s319_s5 = int_to_ptr.vmem [resolvable:$true] %s318_s5 }
  0x11   :  { %392 = vmatprep.subr.bf16.mxu1 %v486_v1  ;;  %s438_s6 = scalar_lea.vmem %s319_s5, 128  ;;  %p443_p1 = scmp.lt.s32.totalorder %s319_s5, %s319_s5 }
  0x12   :  { %407 = vmatpush3.bf16.msra.mxu0 %v431_v14  ;;  %p439_p0 = scmp.ne.s32.totalorder %s319_s5, %s438_s6  ;;  %p444_p2 = scmp.lt.s32.totalorder %s438_s6, %s438_s6 }
  0x13   :  { %408 = vmatprep.subr.bf16.mxu0 %v486_v1 }
  0x14   :  { %393 = vmatpush3.bf16.msra.mxu1 %v426_v9  ;;  %p445_p3 = por %p444_p2, %p443_p1 }
  0x15   :  { %394 = vmatprep.subr.bf16.mxu1 %v486_v1 }
  0x16   :  { %409 = vmatpush3.bf16.msra.mxu0 %v432_v23  ;;  %p446_p4 = pnand %p445_p3, %p439_p0 }
  0x17   :  { %410 = vmatprep.subr.bf16.mxu0 %v486_v1 }
  0x18   :  { %395 = vmatpush3.bf16.msra.mxu1 %v427_v10 }
  0x19   :  { %396 = vmatprep.subr.bf16.mxu1 %v486_v1 }
  0x1a   :  { %411 = vmatpush3.bf16.msra.mxu0 %v433_v24 }
  0x1c   :  { %397 = vmatpush3.bf16.msra.mxu1 %v428_v11 }
  0x1d   :  { %398 = vmatprep.subr.bf16.mxu1 %v486_v1 }
  0x20   :  { %399 = vmatpush3.bf16.msra.mxu1 %v429_v12 }
  0xdc   :  { %v94_v16 = vpop.f32.mrb[0].mxu0 }
  0xdd   :  { %v95_v17 = vadd.f32 %v340_v15, %v94_v16  ;;  %v382_v18 = vpop.f32.mrb[1].mxu0 }
  0xde   :  { %v97_v19 = vpop.f32.mrb[2].mxu0 }
  0xdf   :  { %v100_v20 = vmax.f32 %v95_v17, 0.0  ;;  %v383_v21 = vpop.f32.mrb[3].mxu0 }
  0xe1   :  { %v101_v22 = vpack.c.bf16 %v100_v20, %v100_v20 }
  0xe3   :  { %401 = vmatmul.mubr.bf16.vlgmr.msra.gmra.mrb[0].mxu1 %v101_v22 }
 0x1b6   :  { %v207_v26 = vpop.f32.mrb[0].mxu1 }
 0x1b7   :  { %v208_v27 = vadd.f32 %v344_v25, %v207_v26  ;;  %v402_v28 = vpop.f32.mrb[1].mxu1 }
 0x1b8   :  { %v210_v29 = vpop.f32.mrb[2].mxu1 }
 0x1b9   :  { %v213_v30 = vmax.f32 %v208_v27, 0.0  ;;  %v403_v31 = vpop.f32.mrb[3].mxu1 }
 0x1bb   :  { %v214_v32 = vpack.c.bf16 %v213_v30, %v213_v30 }
 0x1bd   :  { %413 = vmatmul.mubr.msk.bf16.vlgmr.msra.gmra.mrb[4].mxu0 %vm254_vm2, %v214_v32 }
 0x290   :  { %v292_v34 = vpop.f32.mrb[4].mxu0 }
 0x291   :  { %v293_v35 = vadd.f32 %v353_v33, %v292_v34  ;;  %v414_v36 = vpop.f32.mrb[5].mxu0 }
 0x292   :  { %v295_v37 = vpop.f32.mrb[6].mxu0 }
 0x293   :  { %v415_v38 = vpop.f32.mrb[7].mxu0  ;;  %v300_v39 = vsel %vm298_vm3, %v293_v35, -inf  ;;  %299 = vst.msk [vmem:[#allocation2] sm:$0xff] %vm298_vm3, %v293_v35 }
 0x294   :  { %301 = vmax.xlane.f32.xlu0 %v300_v39 }
 0x321   :  { %v302_v40 = vpop.xlane.xlu0 %301 }
 0x322   :  { %v303_v41 = vsub.f32 %v293_v35, %v302_v40 }
 0x324   :  { %v304_v42 = vmul.f32 1.442695, %v303_v41 }
 0x326   :  { %434 = vpow2.f32 %v304_v42 }
 0x330   :  { %v435_v43 = vpop.eup %434 }
 0x331   :  { %v306_v44 = vsel %vm298_vm3, %v435_v43, 0.0 }
 0x332   :  { %307 = vadd.xlane.f32.xlu0 %v306_v44 }
 0x333   :  { %449 = shalt.err (!%p446_p4)
}
 0x334   :  { %s450_s0 = scalar_lea.hbm %s627_s7, 128 }
 0x335   :  { %p451_p5 = scmp.ne.s32.totalorder %s627_s7, %s450_s0  ;;  %p454_p6 = scmp.lt.u32.totalorder %s450_s0, %s627_s7 }
 0x337   :  { %p456_p7 = pnand %p454_p6, %p451_p5 }
 0x339   :  { %459 = shalt.err (!%p456_p7)
}
 0x33a   :  { %321 = dma.vmem_to_hbm [thread:$0]  %s319_s5, 128, %s627_s7, [#allocation3]  }
 0x33b   :  { %s489_s22 = smov [#allocation4]  }
 0x33c   :  { %s328_s23 = sshll.u32 %s489_s22, 4  ;;  %s329_s23 = int_to_ptr.vmem [resolvable:$true] %s328_s23 }
 0x33d   :  { %s460_s24 = scalar_lea.vmem %s329_s23, 128  ;;  %p465_p9 = scmp.lt.s32.totalorder %s329_s23, %s329_s23 }
 0x33e   :  { %p461_p8 = scmp.ne.s32.totalorder %s329_s23, %s460_s24  ;;  %p466_p10 = scmp.lt.s32.totalorder %s460_s24, %s460_s24 }
 0x340   :  { %p467_p11 = por %p466_p10, %p465_p9 }
 0x342   :  { %p468_p12 = pnand %p467_p11, %p461_p8 }
 0x3bf   :  { %v308_v45 = vpop.xlane.xlu0 %307 }
 0x3c0   :  { %436 = vrcp.f32 %v308_v45 }
 0x3ca   :  { %v437_v46 = vpop.eup %436 }
 0x3cb   :  { %v310_v47 = vmul.f32 %v437_v46, %v435_v43 }
 0x3cd   :  { %311 = vst.msk [vmem:[#allocation4] sm:$0xff] %vm298_vm3, %v310_v47 }
 0x3ce   :  { %471 = shalt.err (!%p468_p12)
}
 0x3cf   :  { %s472_s7 = scalar_lea.hbm %s628_s8, 128 }
 0x3d0   :  { %p473_p13 = scmp.ne.s32.totalorder %s628_s8, %s472_s7  ;;  %p476_p0 = scmp.lt.u32.totalorder %s472_s7, %s628_s8 }
 0x3d2   :  { %p478_p1 = pnand %p476_p0, %p473_p13 }
 0x3d4   :  { %481 = shalt.err (!%p478_p1)
}
 0x3d5   :  { %331 = dma.vmem_to_hbm [thread:$0]  %s329_s23, 128, %s628_s8, [#allocation5]  }
 0x3d6   :  { %482 = dma.done.wait [#allocation3], 128  }
 0x3d7   :  { %483 = vsyncadd [#allocation3], 4294967168 }
 0x3d8   :  { %484 = dma.done.wait [#allocation5], 128  }
 0x3d9   :  { %485 = vsyncadd [#allocation5], 4294967168 }
 0x3da   :  { %338 = vsyncpa [#allocation3], 1 }
 0x3db   :  { %339 = vsyncpa [#allocation5], 1 }

</bundles_post_ra>
